<compile_context>
chip_gen: v7x
topology: tpu7x:2x2x1
jax: 0.10.0
libtpu: 0.0.40
codegen_flags: <defaults>
</compile_context>

<pallas_src>
import functools

import jax
import jax.numpy as jnp
from jax.experimental import pallas as pl
from jax.experimental.pallas import tpu as pltpu

LANE = 128


# ----------------------------------------------------------------------------
# Small padding / tiling / plumbing helpers (plain JAX glue)
# ----------------------------------------------------------------------------
def _round_up(x, m):
    return (x + m - 1) // m * m


def _pad2(x, rows, cols):
    r, c = x.shape
    return jnp.pad(x, ((0, rows - r), (0, cols - c)))


@functools.lru_cache(maxsize=None)
def _vmem_limit_bytes():
    """Generation-aware VMEM budget with headroom for compiler scratch."""
    cap = 64 * 1024 * 1024  # conservative default == v7x physical VMEM per TC
    try:
        cap = int(pltpu.get_tpu_info().vmem_capacity_bytes)
    except Exception:
        pass
    # Leave ~16 MiB headroom; clamp to a sane window for all generations.
    return max(32 * 1024 * 1024, min(cap - 16 * 1024 * 1024, 96 * 1024 * 1024))


_BUFFERED1_OK = None


def _buffered1_supported():
    """Probe once whether pipeline_mode=pl.Buffered(1) lowers on this install."""
    global _BUFFERED1_OK
    if _BUFFERED1_OK is None:
        try:
            def _probe(x_ref, o_ref):
                o_ref[...] = x_ref[...]

            x = jnp.zeros((8, 128), jnp.float32)
            out = pl.pallas_call(
                _probe,
                out_shape=jax.ShapeDtypeStruct((8, 128), jnp.float32),
                grid=(1,),
                in_specs=[pl.BlockSpec((8, 128), lambda i: (0, 0),
                                       pipeline_mode=pl.Buffered(1))],
                out_specs=pl.BlockSpec((8, 128), lambda i: (0, 0)),
            )(x)
            jax.block_until_ready(out)
            _BUFFERED1_OK = True
        except Exception:
            _BUFFERED1_OK = False
    return _BUFFERED1_OK


def _const_spec(shape, index_map):
    """BlockSpec for a grid-invariant block (weights / bias).

    Single-buffered when supported: double-buffering a constant block only
    wastes VMEM headroom (matters on v7x's 64 MiB when tiles are pushed up).
    """
    if _buffered1_supported():
        return pl.BlockSpec(shape, index_map, pipeline_mode=pl.Buffered(1))
    return pl.BlockSpec(shape, index_map)


def _conv_tiles(n):
    """Pick (tm, tk, n_p): row tile, neighbor(K) tile, padded node count.

    * n_p: multiple of 256 only (no up-to-511 dead rows/cols of dense A_hat).
    * tm: as large as possible (amortizes per-step overhead and X
      re-streaming) but capped so the parallel row axis has >= 2 blocks so
      both v7x TensorCores get work.
    * tk: largest of {2048,1024,512,256} dividing n_p -> big A_hat DMAs,
      few K steps (per-step work >> ~0.35 µs fixed grid-step overhead).
    """
    n_p = _round_up(max(n, 256), 256)
    tm = next(t for t in (512, 256, 128) if n_p % t == 0 and n_p // t >= 2)
    tk = next(t for t in (2048, 1024, 512, 256) if n_p % t == 0)
    return tm, tk, n_p


# ----------------------------------------------------------------------------
# Pallas kernels
# ----------------------------------------------------------------------------
def _masked_log_softmax(y, n_valid):
    """log_softmax over the first n_valid columns; padded cols -> -inf."""
    col = jax.lax.broadcasted_iota(jnp.int32, y.shape, 1)
    valid = col < n_valid
    y = jnp.where(valid, y, -jnp.inf)
    m = jnp.max(y, axis=-1, keepdims=True)
    e = jnp.where(valid, jnp.exp(y - m), 0.0)
    lse = jnp.log(jnp.sum(e, axis=-1, keepdims=True)) + m
    return y - lse


def _linear_kernel(x_ref, w_ref, b_ref, o_ref, *, act, n_valid):
    """y = act(x @ W + b) for one lane-dense row tile of x."""
    y = jnp.dot(x_ref[...], w_ref[...], preferred_element_type=jnp.float32)
    y = y + b_ref[...]
    if act == "relu":
        y = jnp.maximum(y, 0.0)
    elif act == "log_softmax":
        y = _masked_log_softmax(y, n_valid)
    o_ref[...] = y.astype(o_ref.dtype)


def _fused_conv_kernel(a_ref, x_ref, w_ref, b_ref, x0_ref, rs_ref, o_ref, acc_ref):
    """One fused GCN-AIR layer for a row tile of A_hat, K-tiled over N:

        T   = A_hat[i-tile] @ X                      (accumulated over k)
        out = relu(T @ W + rowsum(A_hat)[i] * b + x0[i-tile])

    which equals relu(A_hat @ (X W + b) + x0) exactly (bias folded via rowsum).
    """
    k = pl.program_id(1)

    @pl.when(k == 0)
    def _():
        acc_ref[...] = jnp.zeros_like(acc_ref)

    # MXU-only inner step (no VPU epilogue per K step).
    acc_ref[...] += jnp.dot(a_ref[...], x_ref[...],
                            preferred_element_type=jnp.float32)

    @pl.when(k == pl.num_programs(1) - 1)
    def _():
        t = acc_ref[...].astype(w_ref.dtype)                # bf16 back into MXU
        y = jnp.dot(t, w_ref[...], preferred_element_type=jnp.float32)
        y = y + rs_ref[...] * b_ref[...] + x0_ref[...].astype(jnp.float32)
        o_ref[...] = jnp.maximum(y, 0.0).astype(o_ref.dtype)


def _fused_conv_head_kernel(a_ref, x_ref, w_ref, b_ref, x0_ref, rs_ref,
                            wo_ref, bo_ref, o_ref, acc_ref, *, n_valid):
    """LAST GCN-AIR layer fused with the output Linear + masked log_softmax:

        h      = relu(A_hat @ (X W + b) + x0)     (as in _fused_conv_kernel)
        o      = log_softmax(h @ W_out + b_out)   (padded cols masked)
    """
    k = pl.program_id(1)

    @pl.when(k == 0)
    def _():
        acc_ref[...] = jnp.zeros_like(acc_ref)

    acc_ref[...] += jnp.dot(a_ref[...], x_ref[...],
                            preferred_element_type=jnp.float32)

    @pl.when(k == pl.num_programs(1) - 1)
    def _():
        t = acc_ref[...].astype(w_ref.dtype)
        y = jnp.dot(t, w_ref[...], preferred_element_type=jnp.float32)
        y = y + rs_ref[...] * b_ref[...] + x0_ref[...].astype(jnp.float32)
        h = jnp.maximum(y, 0.0)
        logits = jnp.dot(h.astype(wo_ref.dtype), wo_ref[...],
                         preferred_element_type=jnp.float32) + bo_ref[...]
        o_ref[...] = _masked_log_softmax(logits, n_valid).astype(o_ref.dtype)


# ----------------------------------------------------------------------------
# Wrappers (pallas_call plumbing)
# ----------------------------------------------------------------------------
def linear_pallas(x, w, b, *, act, out_dtype, tm, n_valid=None):
    """act(x @ w + b), tiled over node rows. x/w bf16, b f32, f32 accumulation."""
    n, k = x.shape
    m = w.shape[1]
    assert n % tm == 0
    cost = pl.CostEstimate(
        flops=2 * n * k * m,
        transcendentals=(n * m) if act == "log_softmax" else 0,
        bytes_accessed=(n * k + k * m) * 2 + m * 4
        + n * m * jnp.dtype(out_dtype).itemsize,
    )
    return pl.pallas_call(
        functools.partial(_linear_kernel, act=act, n_valid=n_valid),
        out_shape=jax.ShapeDtypeStruct((n, m), out_dtype),
        grid=(n // tm,),
        in_specs=[
            pl.BlockSpec((tm, k), lambda i: (i, 0)),      # row tile of x
            _const_spec((k, m), lambda i: (0, 0)),        # full weight
            _const_spec((1, m), lambda i: (0, 0)),        # bias row
        ],
        out_specs=pl.BlockSpec((tm, m), lambda i: (i, 0)),
        compiler_params=pltpu.CompilerParams(
            dimension_semantics=("parallel",),
            vmem_limit_bytes=_vmem_limit_bytes(),
        ),
        cost_estimate=cost,
    )(x, w, b)


def fused_conv_pallas(a, x, w, b, x0, rs, *, tm, tk):
    """relu(A_hat @ (x @ W + b) + x0) as one kernel, K-tiled over neighbors."""
    n = a.shape[0]
    h = w.shape[1]
    assert n % tm == 0 and n % tk == 0
    cost = pl.CostEstimate(
        flops=2 * n * n * h + 2 * n * h * h,
        transcendentals=0,
        bytes_accessed=(n * n + (n // tm) * n * h + 2 * n * h + h * h) * 2
        + n * 4 + h * 4,
    )
    return pl.pallas_call(
        _fused_conv_kernel,
        out_shape=jax.ShapeDtypeStruct((n, h), jnp.bfloat16),
        grid=(n // tm, n // tk),                          # reduction axis last
        in_specs=[
            pl.BlockSpec((tm, tk), lambda i, k: (i, k)),  # A_hat tile
            pl.BlockSpec((tk, h), lambda i, k: (k, 0)),   # X K-slab
            _const_spec((h, h), lambda i, k: (0, 0)),     # W (grid-invariant)
            _const_spec((1, h), lambda i, k: (0, 0)),     # bias row
            pl.BlockSpec((tm, h), lambda i, k: (i, 0)),   # x0 tile (k-invariant)
            pl.BlockSpec((tm, 1), lambda i, k: (i, 0)),   # rowsum(A_hat) column
        ],
        out_specs=pl.BlockSpec((tm, h), lambda i, k: (i, 0)),
        scratch_shapes=[pltpu.VMEM((tm, h), jnp.float32)],
        compiler_params=pltpu.CompilerParams(
            dimension_semantics=("parallel", "arbitrary"),
            vmem_limit_bytes=_vmem_limit_bytes(),
        ),
        cost_estimate=cost,
    )(a, x, w, b, x0, rs)


def fused_conv_head_pallas(a, x, w, b, x0, rs, w_out, b_out, *, tm, tk, n_valid):
    """Last conv layer + output Linear + log_softmax as a single kernel."""
    n = a.shape[0]
    h = w.shape[1]
    m = w_out.shape[1]
    assert n % tm == 0 and n % tk == 0
    cost = pl.CostEstimate(
        flops=2 * n * n * h + 2 * n * h * h + 2 * n * h * m,
        transcendentals=n * m,
        bytes_accessed=(n * n + (n // tm) * n * h + 2 * n * h + h * h + h * m) * 2
        + n * 4 + (h + m) * 4 + n * m * 4,
    )
    return pl.pallas_call(
        functools.partial(_fused_conv_head_kernel, n_valid=n_valid),
        out_shape=jax.ShapeDtypeStruct((n, m), jnp.float32),
        grid=(n // tm, n // tk),
        in_specs=[
            pl.BlockSpec((tm, tk), lambda i, k: (i, k)),  # A_hat tile
            pl.BlockSpec((tk, h), lambda i, k: (k, 0)),   # X K-slab
            _const_spec((h, h), lambda i, k: (0, 0)),     # W
            _const_spec((1, h), lambda i, k: (0, 0)),     # b
            pl.BlockSpec((tm, h), lambda i, k: (i, 0)),   # x0 tile
            pl.BlockSpec((tm, 1), lambda i, k: (i, 0)),   # rowsum(A_hat) column
            _const_spec((h, m), lambda i, k: (0, 0)),     # W_out
            _const_spec((1, m), lambda i, k: (0, 0)),     # b_out
        ],
        out_specs=pl.BlockSpec((tm, m), lambda i, k: (i, 0)),
        scratch_shapes=[pltpu.VMEM((tm, h), jnp.float32)],
        compiler_params=pltpu.CompilerParams(
            dimension_semantics=("parallel", "arbitrary"),
            vmem_limit_bytes=_vmem_limit_bytes(),
        ),
        cost_estimate=cost,
    )(a, x, w, b, x0, rs, w_out, b_out)


# ----------------------------------------------------------------------------
# Model: parameters, dense A_hat, forward, reference
# ----------------------------------------------------------------------------
def init_params(key, in_channels, hidden_channels, out_channels, num_layers):
    """Deterministic uniform(-1/sqrt(fan_in), 1/sqrt(fan_in)) init (PyTorch-like)."""
    def lin(k, fan_in, fan_out):
        kw, kb = jax.random.split(k)
        bound = 1.0 / jnp.sqrt(fan_in)
        w = jax.random.uniform(kw, (fan_in, fan_out), jnp.float32, -bound, bound)
        b = jax.random.uniform(kb, (fan_out,), jnp.float32, -bound, bound)
        return w, b

    keys = jax.random.split(key, num_layers + 2)
    return {
        "lin_in": lin(keys[0], in_channels, hidden_channels),
        "convs": [lin(keys[1 + l], hidden_channels, hidden_channels)
                  for l in range(num_layers)],
        "lin_out": lin(keys[num_layers + 1], hidden_channels, out_channels),
    }


def build_dense_norm_adj(edge_index, num_nodes):
    """Glue: symmetric-normalized dense adjacency with self-loops:
       A_hat = D^{-1/2} (A + I) D^{-1/2}  (equivalent to data.norm per edge)."""
    src, dst = edge_index
    a = jnp.zeros((num_nodes, num_nodes), jnp.float32)
    a = a.at[src, dst].set(1.0)
    a = jnp.maximum(a, a.T)                                          # symmetric
    a = a.at[jnp.arange(num_nodes), jnp.arange(num_nodes)].set(1.0)  # self loops
    deg = jnp.sum(a, axis=1)
    d_inv_sqrt = 1.0 / jnp.sqrt(jnp.maximum(deg, 1.0))
    return a * d_inv_sqrt[:, None] * d_inv_sqrt[None, :]


def gcn_air_forward(params, x, a_hat, dropout=0.5, alpha=0.1, training=False):
    # eval mode: F.dropout is identity; alpha unused in the guessed GCNdenseConv.
    del dropout, alpha, training
    n, in_c = x.shape
    w_in, b_in = params["lin_in"]
    hid = w_in.shape[1]
    w_out, b_out = params["lin_out"]
    out_c = w_out.shape[1]
    num_layers = len(params["convs"])

    # --- tiling / lane padding (rows -> tile multiple, channels -> 128-mult)
    tm, tk, n_p = _conv_tiles(n)
    in_p = _round_up(in_c, LANE)
    hid_p = _round_up(hid, LANE)
    out_p = _round_up(out_c, LANE)

    xp = _pad2(x.astype(jnp.float32), n_p, in_p).astype(jnp.bfloat16)
    ap_f32 = _pad2(a_hat.astype(jnp.float32), n_p, n_p)
    rs = jnp.sum(ap_f32, axis=1, keepdims=True)     # exact bias fold: A_hat @ 1
    ap = ap_f32.astype(jnp.bfloat16)

    w_in_p = _pad2(w_in, in_p, hid_p).astype(jnp.bfloat16)
    b_in_p = jnp.pad(b_in, (0, hid_p - hid)).reshape(1, hid_p).astype(jnp.float32)
    convs_p = [(_pad2(w, hid_p, hid_p).astype(jnp.bfloat16),
                jnp.pad(b, (0, hid_p - hid)).reshape(1, hid_p).astype(jnp.float32))
               for (w, b) in params["convs"]]
    w_out_p = _pad2(w_out, hid_p, out_p).astype(jnp.bfloat16)
    b_out_p = jnp.pad(b_out, (0, out_p - out_c)).reshape(1, out_p).astype(jnp.float32)

    # x = relu(Linear_in(x)); x0 = x
    h = linear_pallas(xp, w_in_p, b_in_p, act="relu",
                      out_dtype=jnp.bfloat16, tm=tm)
    x0 = h

    if num_layers == 0:
        y = linear_pallas(h, w_out_p, b_out_p, act="log_softmax",
                          out_dtype=jnp.float32, tm=tm, n_valid=out_c)
    else:
        # intermediate layers: relu(A_hat @ (h W + b) + x0)
        for (w, b) in convs_p[:-1]:
            h = fused_conv_pallas(ap, h, w, b, x0, rs, tm=tm, tk=tk)
        # last layer fused with output Linear + log_softmax
        w_l, b_l = convs_p[-1]
        y = fused_conv_head_pallas(ap, h, w_l, b_l, x0, rs, w_out_p, b_out_p,
                                   tm=tm, tk=tk, n_valid=out_c)
    return y[:n, :out_c]


def gcn_air_reference(params, x, a_hat):
    """Pure-JAX f32 reference of the same forward (for tolerance checking)."""
    w_in, b_in = params["lin_in"]
    h = jax.nn.relu(x @ w_in + b_in)
    x0 = h
    for (w, b) in params["convs"]:
        h = jax.nn.relu(a_hat @ (h @ w + b) + x0)
    w_out, b_out = params["lin_out"]
    return jax.nn.log_softmax(h @ w_out + b_out, axis=1)


# ----------------------------------------------------------------------------
# Demo
# ----------------------------------------------------------------------------
if __name__ == "__main__":
    N = 128            # number of graph nodes
    IN_C = 32          # in_channels
    HID = 64           # hidden_channels
    OUT_C = 16         # out_channels
    NUM_LAYERS = 2
    NUM_EDGES = 512

    key = jax.random.PRNGKey(0)
    k_x, k_e, k_p = jax.random.split(key, 3)

    x = jax.random.normal(k_x, (N, IN_C), jnp.float32)
    edge_index = jax.random.randint(k_e, (2, NUM_EDGES), 0, N, jnp.int32)
    a_hat = build_dense_norm_adj(edge_index, N)

    params = init_params(k_p, IN_C, HID, OUT_C, NUM_LAYERS)

    out = gcn_air_forward(params, x, a_hat, dropout=0.5, alpha=0.1, training=False)
    out = jax.block_until_ready(out)

    assert out.shape == (N, OUT_C)
    # log_softmax rows must sum to ~1 in prob space
    assert bool(jnp.allclose(jnp.sum(jnp.exp(out), axis=1), 1.0, atol=1e-4))
    # tolerance check vs. the f32 pure-JAX reference (kernel uses bf16 inputs)
    ref = gcn_air_reference(params, x, a_hat)
    assert bool(jnp.max(jnp.abs(out - ref)) < 0.15)

    print("KERNEL_OK")
</pallas_src>

<mosaic_0001>
module attributes {stable_mosaic.version = 11 : i64} {
  func.func @_probe(%arg0: i32, %arg1: memref<8x128xf32, #tpu.memory_space<vmem>>, %arg2: memref<8x128xf32, #tpu.memory_space<vmem>>) attributes {dimension_semantics = [#tpu.dimension_semantics<arbitrary>], iteration_bounds = array<i64: 1>, scalar_prefetch = 0 : i64, scratch_operands = 0 : i64, tpu.core_type = #tpu.core_type<tc>, window_params = [{pipeline_mode = #tpu.pipeline_mode<synchronous>, transform_indices = @transform_0, window_bounds = array<i64: 8, 128>}, {pipeline_mode = #tpu.pipeline_mode<synchronous>, transform_indices = @transform_1, window_bounds = array<i64: 8, 128>}]} {
    %c0 = arith.constant 0 : index
    %c0_0 = arith.constant 0 : index
    %0 = vector.load %arg1[%c0, %c0_0] : memref<8x128xf32, #tpu.memory_space<vmem>>, vector<8x128xf32>
    %c0_1 = arith.constant 0 : index
    %c0_2 = arith.constant 0 : index
    %1 = vector.load %arg2[%c0_1, %c0_2] : memref<8x128xf32, #tpu.memory_space<vmem>>, vector<8x128xf32>
    tpu.vector_store %arg2[%c0_1, %c0_2], %0 {strides = array<i32>} : memref<8x128xf32, #tpu.memory_space<vmem>>, vector<8x128xf32>,
    return
  }
  func.func @transform_0(%arg0: i32) -> (i32, i32) {
    %c0_i32 = arith.constant 0 : i32
    %c0_i32_0 = arith.constant 0 : i32
    %c0_i32_1 = arith.constant 0 : i32
    return %c0_i32, %c0_i32_0 : i32, i32
  }
  func.func @transform_1(%arg0: i32) -> (i32, i32) {
    %c0_i32 = arith.constant 0 : i32
    %c0_i32_0 = arith.constant 0 : i32
    %c0_i32_1 = arith.constant 0 : i32
    return %c0_i32, %c0_i32_0 : i32, i32
  }
}

module attributes {stable_mosaic.version = 11 : i64} {
  func.func @_linear_kernel(%arg0: i32, %arg1: memref<128x128xbf16, #tpu.memory_space<vmem>>, %arg2: memref<128x128xbf16, #tpu.memory_space<vmem>>, %arg3: memref<1x128xf32, #tpu.memory_space<vmem>>, %arg4: memref<128x128xbf16, #tpu.memory_space<vmem>>) attributes {dimension_semantics = [#tpu.dimension_semantics<parallel>], iteration_bounds = array<i64: 2>, scalar_prefetch = 0 : i64, scratch_operands = 0 : i64, tpu.core_type = #tpu.core_type<tc>, window_params = [{transform_indices = @transform_0, window_bounds = array<i64: 128, 128>}, {pipeline_mode = #tpu.pipeline_mode<synchronous>, transform_indices = @transform_1, window_bounds = array<i64: 128, 128>}, {pipeline_mode = #tpu.pipeline_mode<synchronous>, transform_indices = @transform_2, window_bounds = array<i64: 1, 128>}, {transform_indices = @transform_3, window_bounds = array<i64: 128, 128>}]} {
    %c0 = arith.constant 0 : index
    %c0_0 = arith.constant 0 : index
    %0 = vector.load %arg1[%c0, %c0_0] : memref<128x128xbf16, #tpu.memory_space<vmem>>, vector<128x128xbf16>
    %c0_1 = arith.constant 0 : index
    %c0_2 = arith.constant 0 : index
    %1 = vector.load %arg2[%c0_1, %c0_2] : memref<128x128xbf16, #tpu.memory_space<vmem>>, vector<128x128xbf16>
    %cst = arith.constant dense<0.000000e+00> : vector<128x128xf32>
    %2 = tpu.matmul %0, %1, %cst {dimension_numbers = #tpu.dot_dimension_numbers<[1], [0], [0], [1], [0, 0, 1, 1], [], []>} : vector<128x128xbf16>, vector<128x128xbf16>, vector<128x128xf32> -> vector<128x128xf32>
    %c0_3 = arith.constant 0 : index
    %c0_4 = arith.constant 0 : index
    %3 = vector.load %arg3[%c0_3, %c0_4] : memref<1x128xf32, #tpu.memory_space<vmem>>, vector<1x128xf32>
    %4 = vector.broadcast %3 : vector<1x128xf32> to vector<128x128xf32>
    %5 = arith.addf %2, %4 : vector<128x128xf32>
    %cst_5 = arith.constant 0.000000e+00 : f32
    %6 = vector.broadcast %cst_5 : f32 to vector<128x128xf32>
    %7 = arith.maximumf %5, %6 : vector<128x128xf32>
    %8 = arith.truncf %7 : vector<128x128xf32> to vector<128x128xbf16>
    %c0_6 = arith.constant 0 : index
    %c0_7 = arith.constant 0 : index
    %9 = vector.load %arg4[%c0_6, %c0_7] : memref<128x128xbf16, #tpu.memory_space<vmem>>, vector<128x128xbf16>
    tpu.vector_store %arg4[%c0_6, %c0_7], %8 {strides = array<i32>} : memref<128x128xbf16, #tpu.memory_space<vmem>>, vector<128x128xbf16>,
    return
  }
  func.func @transform_0(%arg0: i32) -> (i32, i32) {
    %c0_i32 = arith.constant 0 : i32
    %c0_i32_0 = arith.constant 0 : i32
    return %arg0, %c0_i32 : i32, i32
  }
  func.func @transform_1(%arg0: i32) -> (i32, i32) {
    %c0_i32 = arith.constant 0 : i32
    %c0_i32_0 = arith.constant 0 : i32
    %c0_i32_1 = arith.constant 0 : i32
    return %c0_i32, %c0_i32_0 : i32, i32
  }
  func.func @transform_2(%arg0: i32) -> (i32, i32) {
    %c0_i32 = arith.constant 0 : i32
    %c0_i32_0 = arith.constant 0 : i32
    %c0_i32_1 = arith.constant 0 : i32
    return %c0_i32, %c0_i32_0 : i32, i32
  }
  func.func @transform_3(%arg0: i32) -> (i32, i32) {
    %c0_i32 = arith.constant 0 : i32
    %c0_i32_0 = arith.constant 0 : i32
    return %arg0, %c0_i32 : i32, i32
  }
}

</mosaic_0001>

<bundles_post_ra>
// kernel: tpu_custom_call.1
= control target key start
LH: loop header
LB: loop body
LE: loop exit
PB: predicated region body
PF: predicated region fallthrough
CT: control target
= control target key end

     0   :  { %6 = vsyncpa [#allocation3], 0  ;;  %s124_s0 = inlined_call_operand.hbm [shape: f32[8,128], index: 0, kind: input, shape index: {}]   ;;  %s125_s1 = inlined_call_operand.hbm [shape: f32[8,128], index: 1, kind: output, shape index: {}]  }
   0x1   :  { %7 = vsyncpa [#allocation4], 0  ;;  %s88_s6 = smov [#allocation2]   ;;  %s40_s10 = scalar_lea.hbm %s124_s0, 128 }
   0x2   :  { %s14_s7 = sshll.u32 %s88_s6, 4  ;;  %p41_p0 = scmp.ne.s32.totalorder %s124_s0, %s40_s10  ;;  %s15_s7 = int_to_ptr.vmem [resolvable:$true] %s14_s7 }
   0x3   :  { %p44_p1 = scmp.lt.u32.totalorder %s40_s10, %s124_s0 }
   0x5   :  { %p46_p2 = pnand %p44_p1, %p41_p0 }
   0x7   :  { %49 = shalt.err (!%p46_p2)
}
   0x8   :  { %s50_s15 = scalar_lea.vmem %s15_s7, 128  ;;  %p55_p4 = scmp.lt.s32.totalorder %s15_s7, %s15_s7 }
   0x9   :  { %p51_p3 = scmp.ne.s32.totalorder %s15_s7, %s50_s15  ;;  %p56_p5 = scmp.lt.s32.totalorder %s50_s15, %s50_s15 }
   0xb   :  { %p57_p6 = por %p56_p5, %p55_p4 }
   0xd   :  { %p58_p7 = pnand %p57_p6, %p51_p3 }
   0xf   :  { %61 = shalt.err (!%p58_p7)
}
  0x10   :  { %17 = dma.hbm_to_vmem [thread:$0]  %s124_s0, 128, %s15_s7, [#allocation3]  }
  0x11   :  { %84 = dma.done.wait [#allocation3], 128  }
  0x12   :  { %85 = vsyncadd [#allocation3], 4294967168  ;;  %s89_s18 = smov [#allocation5]   ;;  %v21_v0 = vld [vmem:[#allocation2] sm:$0xff] }
  0x13   :  { %s29_s19 = sshll.u32 %s89_s18, 4  ;;  %22 = vst [vmem:[#allocation5] sm:$0xff] %v21_v0  ;;  %s30_s19 = int_to_ptr.vmem [resolvable:$true] %s29_s19 }
  0x14   :  { %s62_s20 = scalar_lea.vmem %s30_s19, 128  ;;  %p67_p9 = scmp.lt.s32.totalorder %s30_s19, %s30_s19 }
  0x15   :  { %p63_p8 = scmp.ne.s32.totalorder %s30_s19, %s62_s20  ;;  %p68_p10 = scmp.lt.s32.totalorder %s62_s20, %s62_s20 }
  0x17   :  { %p69_p11 = por %p68_p10, %p67_p9 }
  0x19   :  { %p70_p12 = pnand %p69_p11, %p63_p8 }
  0x1b   :  { %73 = shalt.err (!%p70_p12)
}
  0x1c   :  { %s74_s23 = scalar_lea.hbm %s125_s1, 128 }
  0x1d   :  { %p75_p13 = scmp.ne.s32.totalorder %s125_s1, %s74_s23  ;;  %p78_p0 = scmp.lt.u32.totalorder %s74_s23, %s125_s1 }
  0x1f   :  { %p80_p1 = pnand %p78_p0, %p75_p13 }
  0x21   :  { %83 = shalt.err (!%p80_p1)
}
  0x22   :  { %32 = dma.vmem_to_hbm [thread:$0]  %s30_s19, 128, %s125_s1, [#allocation4]  }
  0x23   :  { %86 = dma.done.wait [#allocation4], 128  }
  0x24   :  { %87 = vsyncadd [#allocation4], 4294967168 }
  0x25   :  { %36 = vsyncpa [#allocation3], 1 }
  0x26   :  { %37 = vsyncpa [#allocation4], 1 }

// kernel: tpu_custom_call.1
= control target key start
LH: loop header
LB: loop body
LE: loop exit
PB: predicated region body
PF: predicated region fallthrough
CT: control target
= control target key end

     0   :  { %8 = vsyncpa [#allocation3], 0  ;;  %s1279_s0 = inlined_call_operand.hbm [shape: bf16[256,128], index: 0, kind: input, shape index: {}]   ;;  %s1280_s1 = inlined_call_operand.hbm [shape: bf16[128,128], index: 1, kind: input, shape index: {}]   ;;  %s1281_s2 = inlined_call_operand.vmem [shape: f32[1,128], index: 2, kind: input, shape index: {}]   ;;  %s1282_s3 = inlined_call_operand.hbm [shape: bf16[256,128], index: 3, kind: output, shape index: {}]  }
   0x1   :  { %10 = vsyncpa [#allocation3 + $0x1], 0 }
   0x2   :  { %11 = vsyncpa [#allocation6], 0 }
   0x3   :  { %12 = vsyncpa [#allocation4], 0 }
   0x4   :  { %14 = vsyncpa [#allocation4 + $0x1], 0  ;;  %s1044_s12 = smov 0   ;;  %s1046_s13 = smov 0  }
   0x5   :  { %s1048_s14 = smov 0   ;;  %s1050_s15 = smov 0  }
   0x6 LB: > { %s1065_s16 = sadd.s32 4294967295, %s1015_s15   ;;  %s632_s17 = sadd.s32 4294967294, %s1015_s15   ;;  %s1015_s15 = sphi %s1050_s15, %s1302_s15   ;;  %s1011_s14 = sphi %s1048_s14, %s1301_s14   ;;  %s1007_s13 = sphi %s1046_s13, %s1300_s13   ;;  %s1003_s12 = sphi %s1044_s12, %s1299_s12  }
   0x7   : > { %p40_p0 = scmp.ne.s32.totalorder %s1007_s13, %s1003_s12  ;;  %p1283_p1 = scmp.eq.s32.totalorder %s1065_s16, 0 }
   0x8   : > { %p112_p3 = scmp.eq.s32.totalorder %s632_s17, 1  ;;  %p633_p5 = scmp.ge.s32.totalorder %s1015_s15, 1 }
   0x9   : > { %p1074_p4 = por %p1283_p1, %p40_p0  ;;  %p119_p7 = scmp.lt.s32.totalorder %s1015_s15, 3 }
   0xa   : > { %p1079_p6 = por %p112_p3, %p40_p0  ;;  %s1017_s21 = smov [#allocation5]  }
   0xb   : > { %s1286_s18 = scalar_select %p1074_p4, 1, 0 }
   0xc   : > { %s1287_s19 = scalar_select %p1079_p6, 1, 0 }
   0xd   : > { %p1084_p8 = pnand %p633_p5, %p119_p7  ;;  %s131_s22 = sshll.u32 %s1017_s21, 4  ;;  %s1088_s22 = int_to_ptr.vmem [resolvable:$true] %s131_s22 }
   0xe   : > { %s1100_s24 = sadd.s32 1, %s1015_s15   ;;  %s27_s25 = sadd.s32 1, %s1011_s14 }
   0xf   : > { %s1288_s20 = scalar_select %p1084_p8, 1, 0 }
  0x10   : > { %p818_p9 = pneg %p1084_p8  ;;  %s24_s26 = ssub.s32 %s1015_s15, %s1100_s24 }
  0x11   : > { %s887_s29 = scalar_lea.hbm %s1280_s1, 1024 }
  0x12   : > { %p1095_p11 = pnand %p818_p9, %p1283_p1  ;;  %p888_p12 = scmp.ne.s32.totalorder %s1280_s1, %s887_s29 }
  0x13   : > { %p894_p5 = scmp.lt.u32.totalorder %s887_s29, %s1280_s1 }
  0x14   : > { %p889_p13 = pneg %p1095_p11 }
  0x16   : > { %p890_p0 = pnand %p889_p13, %p888_p12 }
  0x18   : > { %p891_p3 = pneg %p890_p0 }
  0x1a   : > { %p896_p7 = pnand %p894_p5, %p891_p3 }
  0x1c   : > { %899 = shalt.err (!%p896_p7)
}
  0x1d   : > { %s900_s7 = scalar_lea.vmem %s1088_s22, 1024  ;;  %p908_p2 = scmp.lt.s32.totalorder %s1088_s22, %s1088_s22 }
  0x1e   : > { %p901_p9 = scmp.ne.s32.totalorder %s1088_s22, %s900_s7  ;;  %p909_p6 = scmp.lt.s32.totalorder %s900_s7, %s900_s7 }
  0x20   : > { %p903_p10 = pnand %p901_p9, %p889_p13  ;;  %p910_p4 = por %p909_p6, %p908_p2 }
  0x22   : > { %p904_p1 = pneg %p903_p10 }
  0x24   : > { %p911_p8 = pnand %p910_p4, %p904_p1 }
  0x26   : > { %914 = shalt.err (!%p911_p8)
}
  0x27   : > { %s1018_s8 = smov 64   ;;  %s1019_s9 = smov 4  }
  0x28   : > { %821 = dma.hbm_to_vmem [thread:$0]  (!%p1095_p11), %s1280_s1, 1024, %s1088_s22, [#allocation6], %s1018_s8, %s1018_s8, %s1019_s9  }
  0x29   : > { %p25_p1 = scmp.eq.s32.totalorder %s24_s26, 0  ;;  %p34_p2 = scmp.ne.s32.totalorder %s1011_s14, %s1007_s13 }
  0x2a   : > { %p35_p4 = scmp.eq.s32.totalorder %s1015_s15, 0  ;;  %p831_p6 = scmp.lt.s32.totalorder %s1015_s15, 2 }
  0x2b   : > { %s1134_s17 = scalar_select %p25_p1, %s1011_s14, %s27_s25  }
  0x2c   : > { %p36_p8 = por %p35_p4, %p34_p2  ;;  %p1290_p10 = scmp.eq.s32.totalorder %s1065_s16, 1 }
  0x2d   : > { %s148_s23 = sand.u32 1, %s1011_s14   ;;  %s681_s27 = sshll.u32 %s1015_s15, 10 }
  0x2e   : > { %p1138_p12 = por %p1290_p10, %p34_p2  ;;  %s636_s28 = sshll.u32 %s148_s23, 6 }
  0x2f   : > { %s1147_s4 = scalar_lea.hbm %s1279_s0, %s681_s27  ;;  %s152_s22 = scalar_lea.vmem [#allocation2], %s636_s28 }
  0x30   : > { %s159_s25 = sshll.u32 %s152_s22, 4  ;;  %p1149_p11 = pnand %p831_p6, %p36_p8  ;;  %s1153_s25 = int_to_ptr.vmem [resolvable:$true] %s159_s25 }
  0x31   : > { %s1155_s5 = scalar_lea.sflag [#allocation3], %s148_s23  ;;  %s915_s6 = scalar_lea.hbm %s1147_s4, 1024 }
  0x32   : > { %p916_p13 = scmp.ne.s32.totalorder %s1147_s4, %s915_s6  ;;  %p917_p0 = pneg %p1149_p11 }
  0x33   : > { %s920_s11 = scalar_lea.hbm %s1279_s0, 2048  ;;  %p921_p7 = scmp.lt.u32.totalorder %s1147_s4, %s1279_s0 }
  0x34   : > { %p918_p3 = pnand %p917_p0, %p916_p13  ;;  %p922_p9 = scmp.lt.u32.totalorder %s920_s11, %s915_s6 }
  0x35   : > { %p924_p2 = scmp.lt.u32.totalorder %s915_s6, %s1147_s4 }
  0x36   : > { %p919_p5 = pneg %p918_p3  ;;  %p923_p1 = por %p922_p9, %p921_p7 }
  0x38   : > { %p925_p4 = por %p924_p2, %p923_p1 }
  0x3a   : > { %p926_p6 = pnand %p925_p4, %p919_p5 }
  0x3c   : > { %929 = shalt.err (!%p926_p6)
}
  0x3d   : > { %s930_s23 = scalar_lea.vmem %s1153_s25, 1024  ;;  %s1020_s29 = smov [#allocation2]  }
  0x3e   : > { %p931_p8 = scmp.ne.s32.totalorder %s1153_s25, %s930_s23  ;;  %s935_s30 = sshll.u32 %s1020_s29, 4  ;;  %s936_s30 = int_to_ptr.vmem [resolvable:$false] %s935_s30 }
  0x3f   : > { %s937_s22 = scalar_lea.vmem %s936_s30, 2048  ;;  %p938_p3 = scmp.lt.s32.totalorder %s1153_s25, %s936_s30 }
  0x40   : > { %p933_p10 = pnand %p931_p8, %p917_p0  ;;  %p939_p7 = scmp.lt.s32.totalorder %s937_s22, %s930_s23 }
  0x42   : > { %p934_p13 = pneg %p933_p10  ;;  %p940_p9 = por %p939_p7, %p938_p3 }
  0x44   : > { %p941_p1 = pnand %p940_p9, %p934_p13 }
  0x46   : > { %944 = shalt.err (!%p941_p1)
}
  0x47   : > { %825 = dma.hbm_to_vmem [thread:$0]  (!%p1149_p11), %s1147_s4, 1024, %s1153_s25, %s1155_s5, %s1018_s8, %s1018_s8, %s1019_s9  }
  0x48   : > { %p1293_p0 = scmp.ne.s32.totalorder %s1288_s20, 0 }
  0x49   : > { %s1189_s6 = sand.u32 (!%p1293_p0), 1, %s1007_s13   ;;  %p1294_p5 = scmp.ne.s32.totalorder (!%p1293_p0), %s1286_s18, 0 }
  0x4a   : > { %171 = sbr.rel (%p1293_p0) target bundleno = 362 (0x16a), region = 32  ;;  %s640_s7 = sshll.u32 (!%p1293_p0), %s1189_s6, 6 }
  0x4b   : > { %s174_s10 = scalar_lea.sflag (!%p1293_p0), [#allocation3], %s1189_s6  ;;  %s1195_s26 = scalar_lea.vmem (!%p1293_p0), [#allocation2], %s640_s7 }
  0x51   : > { %990 = dma.done.wait (%p1294_p5), %s174_s10, 1024  }
  0x52   : > { %992 = vsyncadd (%p1294_p5), %s174_s10, 4294966272  ;;  %p1295_p11 = scmp.eq.s32.totalorder %s1065_s16, 0 }
  0x54   : > { %994 = dma.done.wait (%p1295_p11), [#allocation6], 1024   ;;  %p1296_p2 = pmov %p1295_p11 }
  0x55   : > { %v871_v0 = vld [vmem:[#allocation5] sm:$0xff]   ;;  %v872_v1 = vld [vmem:[#allocation5 + $0x8] sm:$0xff]   ;;  %v873_v2 = vld [vmem:[#allocation5 + $0x10] sm:$0xff]   ;;  %s1218_s8 = scalar_lea.vmem [#allocation7], %s640_s7  ;;  %s698_s4 = sshll.u32 %s1065_s16, 10 }
  0x56   : > { %996 = vsyncadd (%p1296_p2), [#allocation6], 4294966272  ;;  %762 = vmatprep.subr.bf16.mxu0 %v871_v0  ;;  %794 = vmatprep.subr.bf16.mxu1 %v871_v0  ;;  %v874_v3 = vld [vmem:[#allocation5 + $0x18] sm:$0xff]   ;;  %v879_v4 = vld [vmem:[%s1195_s26] sm:$0xff]   ;;  %s549_s9 = sshll.u32 %s1218_s8, 4  ;;  %s1231_s5 = scalar_lea.hbm %s1282_s3, %s698_s4  ;;  %s1226_s9 = int_to_ptr.vmem [resolvable:$true] %s549_s9 }
  0x57   : > { %763 = vmatpush3.bf16.msra.mxu0 %v871_v0  ;;  %802 = vmatpush3.bf16.msra.mxu1 %v871_v0  ;;  %v880_v5 = vld [vmem:[%s1195_s26 + $0x20] sm:$0xff]   ;;  %v876_v7 = vld [vmem:[#allocation5 + $0x28] sm:$0xff]   ;;  %v877_v8 = vld [vmem:[#allocation5 + $0x30] sm:$0xff]   ;;  %s536_s11 = scalar_lea.sflag [#allocation4], %s1189_s6  ;;  %s945_s27 = scalar_lea.vmem %s1226_s9, 1024 }
  0x58   : > { %764 = vmatprep.subr.bf16.mxu0 %v872_v1  ;;  %795 = vmatprep.subr.bf16.mxu1 %v872_v1  ;;  %v875_v6 = vld [vmem:[#allocation5 + $0x20] sm:$0xff]   ;;  %v878_v9 = vld [vmem:[#allocation5 + $0x38] sm:$0xff]   ;;  %v881_v10 = vld [vmem:[%s1195_s26 + $0x8] sm:$0xff]   ;;  %p946_p4 = scmp.ne.s32.totalorder %s1226_s9, %s945_s27  ;;  %s1021_s28 = smov [#allocation7]  }
  0x59   : > { %778 = vmatprep.mubr.bf16.mxu0 %v879_v4  ;;  %786 = vmatprep.mubr.bf16.mxu1 %v880_v5  ;;  %v882_v11 = vld [vmem:[%s1195_s26 + $0x28] sm:$0xff]   ;;  %v883_v12 = vld [vmem:[%s1195_s26 + $0x10] sm:$0xff]   ;;  %v885_v14 = vld [vmem:[%s1195_s26 + $0x18] sm:$0xff]   ;;  %s949_s23 = sshll.u32 %s1021_s28, 4  ;;  %s950_s23 = int_to_ptr.vmem [resolvable:$false] %s949_s23 }
  0x5a   : > { %v884_v13 = vld [vmem:[%s1195_s26 + $0x30] sm:$0xff]   ;;  %v886_v15 = vld [vmem:[%s1195_s26 + $0x38] sm:$0xff]   ;;  %v643_v16 = vld [vmem:[%s1281_s2] ss:$0 sm:$0xff]  ;;  %p947_p6 = pnand %p946_p4, %p1138_p12  ;;  %s951_s29 = scalar_lea.vmem %s950_s23, 2048 }
  0x5b   : > { %765 = vmatpush3.bf16.msra.mxu0 %v872_v1  ;;  %803 = vmatpush3.bf16.msra.mxu1 %v872_v1  ;;  %p952_p10 = scmp.lt.s32.totalorder %s1226_s9, %s950_s23  ;;  %p953_p13 = scmp.lt.s32.totalorder %s951_s29, %s945_s27 }
  0x5c   : > { %766 = vmatprep.subr.bf16.mxu0 %v873_v2  ;;  %796 = vmatprep.subr.bf16.mxu1 %v873_v2  ;;  %p948_p8 = pneg %p947_p6 }
  0x5d   : > { %p954_p3 = por %p953_p13, %p952_p10 }
  0x5f   : > { %767 = vmatpush3.bf16.msra.mxu0 %v873_v2  ;;  %804 = vmatpush3.bf16.msra.mxu1 %v873_v2  ;;  %p955_p7 = pnand %p954_p3, %p948_p8 }
  0x60   : > { %768 = vmatprep.subr.bf16.mxu0 %v874_v3  ;;  %797 = vmatprep.subr.bf16.mxu1 %v874_v3 }
  0x63   : > { %769 = vmatpush3.bf16.msra.mxu0 %v874_v3  ;;  %805 = vmatpush3.bf16.msra.mxu1 %v874_v3 }
  0x64   : > { %770 = vmatprep.subr.bf16.mxu0 %v875_v6  ;;  %798 = vmatprep.subr.bf16.mxu1 %v875_v6 }
  0x67   : > { %771 = vmatpush3.bf16.msra.mxu0 %v875_v6  ;;  %806 = vmatpush3.bf16.msra.mxu1 %v875_v6 }
  0x68   : > { %772 = vmatprep.subr.bf16.mxu0 %v876_v7  ;;  %799 = vmatprep.subr.bf16.mxu1 %v876_v7 }
  0x6b   : > { %773 = vmatpush3.bf16.msra.mxu0 %v876_v7  ;;  %807 = vmatpush3.bf16.msra.mxu1 %v876_v7 }
  0x6c   : > { %774 = vmatprep.subr.bf16.mxu0 %v877_v8  ;;  %800 = vmatprep.subr.bf16.mxu1 %v877_v8 }
  0x6f   : > { %775 = vmatpush3.bf16.msra.mxu0 %v877_v8  ;;  %808 = vmatpush3.bf16.msra.mxu1 %v877_v8 }
  0x70   : > { %776 = vmatprep.subr.bf16.mxu0 %v878_v9  ;;  %801 = vmatprep.subr.bf16.mxu1 %v878_v9 }
  0x73   : > { %777 = vmatpush3.bf16.msra.mxu0 %v878_v9  ;;  %809 = vmatpush3.bf16.msra.mxu1 %v878_v9 }
  0x76   : > { %779 = vmatmul.mubr.bf16.vlgmr.msra.gmra.mrb[0].mxu0 %v881_v10  ;;  %787 = vmatmul.mubr.bf16.vlgmr.msra.gmra.mrb[0].mxu1 %v882_v11 }
  0x77   : > { %782 = vmatprep.mubr.bf16.mxu0 %v883_v12  ;;  %790 = vmatprep.mubr.bf16.mxu1 %v884_v13 }
  0x7e   : > { %783 = vmatmul.mubr.bf16.gmra.mrb[4].mxu0 %v885_v14  ;;  %791 = vmatmul.mubr.bf16.gmra.mrb[4].mxu1 %v886_v15 }
 0x149   : > { %v780_v17 = vpop.f32.mrb[0].mxu0  ;;  %v788_v18 = vpop.f32.mrb[0].mxu1 }
 0x14a   : > { %v385_v19 = vadd.f32 %v780_v17, %v643_v16  ;;  %v417_v20 = vadd.f32 %v788_v18, %v643_v16  ;;  %v376_v21 = vpop.f32.mrb[1].mxu0  ;;  %v408_v22 = vpop.f32.mrb[1].mxu1 }
 0x14b   : > { %v377_v23 = vadd.f32 %v643_v16, %v376_v21  ;;  %v409_v24 = vadd.f32 %v643_v16, %v408_v22  ;;  %v781_v25 = vpop.f32.mrb[2].mxu0  ;;  %v789_v26 = vpop.f32.mrb[2].mxu1 }
 0x14c   : > { %v388_v27 = vadd.f32 %v781_v25, %v643_v16  ;;  %v420_v28 = vadd.f32 %v789_v26, %v643_v16  ;;  %v379_v29 = vpop.f32.mrb[3].mxu0  ;;  %v411_v30 = vpop.f32.mrb[3].mxu1  ;;  %v441_v33 = vmax.f32 %v385_v19, 0.0  ;;  %v449_v34 = vmax.f32 %v417_v20, 0.0 }
 0x14d   : > { %v380_v31 = vadd.f32 %v643_v16, %v379_v29  ;;  %v412_v32 = vadd.f32 %v643_v16, %v411_v30  ;;  %v439_v37 = vmax.f32 %v377_v23, 0.0  ;;  %v447_v38 = vmax.f32 %v409_v24, 0.0 }
 0x14e   : > { %v442_v35 = vmax.f32 %v388_v27, 0.0  ;;  %v450_v36 = vmax.f32 %v420_v28, 0.0 }
 0x14f   : > { %v440_v39 = vmax.f32 %v380_v31, 0.0  ;;  %v448_v40 = vmax.f32 %v412_v32, 0.0 }
 0x150   : > { %v707_v41 = vpack.c.bf16 %v442_v35, %v441_v33  ;;  %v727_v42 = vpack.c.bf16 %v450_v36, %v449_v34 }
 0x151   : > { %v702_v43 = vpack.c.bf16 %v440_v39, %v439_v37  ;;  %v722_v44 = vpack.c.bf16 %v448_v40, %v447_v38  ;;  %v784_v45 = vpop.f32.mrb[4].mxu0  ;;  %v792_v46 = vpop.f32.mrb[4].mxu1 }
 0x152   : > { %739 = vst [vmem:[%s1218_s8 + $0x8] sm:$0xff] %v707_v41   ;;  %743 = vst [vmem:[%s1218_s8 + $0x28] sm:$0xff] %v727_v42   ;;  %v401_v47 = vadd.f32 %v784_v45, %v643_v16  ;;  %v433_v48 = vadd.f32 %v792_v46, %v643_v16  ;;  %v392_v49 = vpop.f32.mrb[5].mxu0  ;;  %v424_v50 = vpop.f32.mrb[5].mxu1 }
 0x153   : > { %703 = vst [vmem:[%s1218_s8] sm:$0xff] %v702_v43   ;;  %742 = vst [vmem:[%s1218_s8 + $0x20] sm:$0xff] %v722_v44   ;;  %v393_v51 = vadd.f32 %v643_v16, %v392_v49  ;;  %v425_v52 = vadd.f32 %v643_v16, %v424_v50  ;;  %v785_v53 = vpop.f32.mrb[6].mxu0  ;;  %v793_v54 = vpop.f32.mrb[6].mxu1 }
 0x154   : > { %v404_v55 = vadd.f32 %v785_v53, %v643_v16  ;;  %v436_v56 = vadd.f32 %v793_v54, %v643_v16  ;;  %v395_v57 = vpop.f32.mrb[7].mxu0  ;;  %v427_v58 = vpop.f32.mrb[7].mxu1  ;;  %v445_v61 = vmax.f32 %v401_v47, 0.0  ;;  %v453_v62 = vmax.f32 %v433_v48, 0.0 }
 0x155   : > { %v396_v59 = vadd.f32 %v643_v16, %v395_v57  ;;  %v428_v60 = vadd.f32 %v643_v16, %v427_v58  ;;  %v443_v1 = vmax.f32 %v393_v51, 0.0  ;;  %v451_v2 = vmax.f32 %v425_v52, 0.0 }
 0x156   : > { %v446_v63 = vmax.f32 %v404_v55, 0.0  ;;  %v454_v0 = vmax.f32 %v436_v56, 0.0 }
 0x157   : > { %v444_v3 = vmax.f32 %v396_v59, 0.0  ;;  %v452_v4 = vmax.f32 %v428_v60, 0.0 }
 0x158   : > { %v717_v5 = vpack.c.bf16 %v446_v63, %v445_v61  ;;  %v737_v6 = vpack.c.bf16 %v454_v0, %v453_v62 }
 0x159   : > { %v712_v7 = vpack.c.bf16 %v444_v3, %v443_v1  ;;  %v732_v8 = vpack.c.bf16 %v452_v4, %v451_v2 }
 0x15a   : > { %741 = vst [vmem:[%s1218_s8 + $0x18] sm:$0xff] %v717_v5   ;;  %745 = vst [vmem:[%s1218_s8 + $0x38] sm:$0xff] %v737_v6  }
 0x15b   : > { %740 = vst [vmem:[%s1218_s8 + $0x10] sm:$0xff] %v712_v7   ;;  %744 = vst [vmem:[%s1218_s8 + $0x30] sm:$0xff] %v732_v8  }
 0x15c   : > { %958 = shalt.err (!%p955_p7)
}
 0x15d   : > { %s959_s30 = scalar_lea.hbm %s1231_s5, 1024  ;;  %s963_s10 = scalar_lea.hbm %s1282_s3, 2048 }
 0x15e   : > { %p960_p9 = scmp.ne.s32.totalorder %s1231_s5, %s959_s30  ;;  %p964_p5 = scmp.lt.u32.totalorder %s1231_s5, %s1282_s3 }
 0x15f   : > { %p965_p11 = scmp.lt.u32.totalorder %s963_s10, %s959_s30  ;;  %p967_p4 = scmp.lt.u32.totalorder %s959_s30, %s1231_s5 }
 0x160   : > { %p961_p1 = pnand %p960_p9, %p1138_p12 }
 0x161   : > { %p966_p2 = por %p965_p11, %p964_p5 }
 0x162   : > { %p962_p0 = pneg %p961_p1 }
 0x163   : > { %p968_p6 = por %p967_p4, %p966_p2 }
 0x165   : > { %p969_p8 = pnand %p968_p6, %p962_p0 }
 0x167   : > { %972 = shalt.err (!%p969_p8)
}
 0x168   : > { %s1022_s20 = smov 64   ;;  %s1023_s8 = smov 4  }
 0x169   : > { %816 = dma.vmem_to_hbm [thread:$0]  (%p1138_p12), %s1226_s9, 1024, %s1231_s5, %s536_s11, %s1022_s20, %s1022_s20, %s1023_s8  }
 0x16a PF: > { %s564_s4 = sand.u32 1, %s1003_s12   ;;  %p1297_p10 = scmp.ne.s32.totalorder %s1287_s19, 0 }
 0x16b   : > { %p1298_p13 = scmp.ge.s32.totalorder %s1015_s15, 2  ;;  %s565_s16 = scalar_lea.sflag [#allocation4], %s564_s4 }
 0x16d   : > { %p827_p3 = pnand %p1298_p13, %p1297_p10 }
 0x16f   : > { %998 = dma.done.wait (!%p827_p3), %s565_s16, 1024  }
 0x170   : > { %1000 = vsyncadd (!%p827_p3), %s565_s16, 4294966272  ;;  %p17_p7 = scmp.ge.s32.totalorder %s1100_s24, 4   ;;  %s1299_s12 = smov %s1007_s13 }
 0x171   : > { %s1300_s13 = smov %s1011_s14  ;;  %s1301_s14 = smov %s1134_s17 }
 0x172   : > { %s1302_s15 = smov %s1100_s24  ;;  %19 = sbr.rel (!%p17_p7) target bundleno = 6 (0x6), region = 81 }
 0x179   :  { %570 = vsyncpa [#allocation3], 1 }
 0x17a   :  { %572 = vsyncpa [#allocation3 + $0x1], 1 }
 0x17b   :  { %573 = vsyncpa [#allocation6], 1 }
 0x17c   :  { %574 = vsyncpa [#allocation4], 1 }
 0x17d   :  { %576 = vsyncpa [#allocation4 + $0x1], 1 }

</bundles_post_ra>
